<compile_context>
chip_gen: v5e
topology: v5e:2x2
jax: 0.10.0
libtpu: 0.0.40
codegen_flags: <defaults>
</compile_context>

<pallas_src>
import jax
import jax.numpy as jnp
from jax.experimental import pallas as pl
from jax.experimental.pallas import tpu as pltpu


def _round_up(x: int, m: int) -> int:
    return ((x + m - 1) // m) * m


# ---------------------------------------------------------------------------
# Pallas kernels
# ---------------------------------------------------------------------------
def _linear_resident_kernel(x_ref, w_ref, b_ref, o_ref):
    """y = x @ W + b with the full K extent resident in VMEM (no K grid axis)."""
    acc = jnp.dot(x_ref[...], w_ref[...], preferred_element_type=jnp.float32)
    o_ref[...] = (acc + b_ref[...]).astype(o_ref.dtype)


def _linear_tiled_kernel(x_ref, w_ref, b_ref, o_ref, acc_ref):
    """Tiled y = x @ W + b with f32 accumulation over the (last) K grid axis."""
    k = pl.program_id(2)

    @pl.when(k == 0)
    def _():
        acc_ref[...] = jnp.zeros_like(acc_ref)

    acc_ref[...] += jnp.dot(
        x_ref[...], w_ref[...], preferred_element_type=jnp.float32
    )

    @pl.when(k == pl.num_programs(2) - 1)
    def _():
        o_ref[...] = (acc_ref[...] + b_ref[...]).astype(o_ref.dtype)


def _reg_kernel(p_ref, l1_ref, l2_ref, abs_acc, sq_acc):
    """Streaming sum(|p|) and sum(p^2) over a lane-dense f32 parameter slab.

    Per-step work is pure VPU (elementwise abs/mul/add into VMEM vector
    accumulators); the cross-lane/cross-sublane reduction happens once, on the
    final grid step.
    """
    i = pl.program_id(0)

    @pl.when(i == 0)
    def _():
        abs_acc[...] = jnp.zeros_like(abs_acc)
        sq_acc[...] = jnp.zeros_like(sq_acc)

    p = p_ref[...]
    abs_acc[...] += jnp.abs(p)
    sq_acc[...] += p * p

    @pl.when(i == pl.num_programs(0) - 1)
    def _():
        l1_ref[...] = jnp.sum(abs_acc[...], keepdims=True)
        l2_ref[...] = jnp.sum(sq_acc[...], keepdims=True)


# ---------------------------------------------------------------------------
# Python-side module mirroring BaseNeuralNetwork
# ---------------------------------------------------------------------------
class BaseNeuralNetworkPallas:
    _TM = 128            # fixed M tile: one compiled kernel per input shape
    _TN_MAX = 512        # lane-dense, 128-multiple N tile ceiling
    _TK_MAX = 1024       # K tile ceiling for the tiled (large-K) path
    _REG_COLS = 512
    _REG_ROW_TILE_MAX = 512

    def __init__(self, in_features: int, out_features: int,
                 model_name: str | None = None, dtype=jnp.float32,
                 compute_dtype=jnp.bfloat16,
                 resident_limit_bytes: int = 2 * 1024 * 1024,
                 tk_max: int | None = None):
        self._model_name = model_name or self.__class__.__name__
        self._in_features = in_features
        self._out_features = out_features
        self.dtype = dtype
        self._compute_dtype = compute_dtype

        # Deterministic synthetic parameters (shapes implied by __init__ args).
        kw, kb = jax.random.split(jax.random.PRNGKey(0))
        self.weight = (jax.random.normal(kw, (in_features, out_features),
                                         jnp.float32)
                       * (1.0 / jnp.sqrt(in_features))).astype(dtype)
        self.bias = (jax.random.normal(kb, (1, out_features), jnp.float32)
                     * 0.01).astype(dtype)

        # ---- static tiling decisions (made once) ---------------------------
        itemsize = jnp.dtype(compute_dtype).itemsize
        k128 = _round_up(in_features, 128)
        self._tn = min(self._TN_MAX, _round_up(out_features, 128))
        self._Np = _round_up(out_features, self._tn)
        # Resident-W path: the (Kp, tn) weight block stays fully in VMEM.
        self._resident = k128 * self._tn * itemsize <= resident_limit_bytes
        tk_cap = tk_max if tk_max is not None else self._TK_MAX
        self._tk = k128 if self._resident else min(tk_cap, k128)
        self._Kp = _round_up(in_features, self._tk)

        self._refresh_derived_buffers()

    # --- parameter-derived buffers / caches ---------------------------------
    def _refresh_derived_buffers(self):
        K, N = self._in_features, self._out_features
        # Padded, bf16 (compute-dtype) weights; f32 bias. Padded once at init.
        self._w_pad = jnp.zeros((self._Kp, self._Np), self._compute_dtype).at[
            :K, :N].set(self.weight.astype(self._compute_dtype))
        self._b_pad = jnp.zeros((1, self._Np), jnp.float32).at[
            :, :N].set(self.bias.astype(jnp.float32))

        # Lane-dense f32 slab holding all parameters for the reg reduction.
        flat = jnp.concatenate([self.weight.astype(jnp.float32).reshape(-1),
                                self.bias.astype(jnp.float32).reshape(-1)])
        cols = self._REG_COLS
        rows = max(1, pl.cdiv(int(flat.size), cols))
        row_tile = min(self._REG_ROW_TILE_MAX, _round_up(rows, 8))
        rows_p = _round_up(rows, row_tile)
        slab = jnp.zeros((rows_p * cols,), jnp.float32).at[:flat.size].set(flat)
        self._params_2d = slab.reshape(rows_p, cols)
        self._reg_row_tile = row_tile
        self._reg_grid = rows_p // row_tile

        self._cached_sums = None
        # Fresh jit so stale closed-over parameter constants are dropped.
        self._forward_fn = jax.jit(self._forward_impl)

    def update_parameters(self, weight: jnp.ndarray, bias: jnp.ndarray):
        """Replace parameters and invalidate all derived caches."""
        self.weight = weight.astype(self.dtype)
        self.bias = bias.reshape(1, -1).astype(self.dtype)
        self._refresh_derived_buffers()
        return self

    @property
    def in_features(self) -> int:
        return self._in_features

    @property
    def out_features(self) -> int:
        return self._out_features

    # --- forward / predict ---------------------------------------------------
    # TODO(synk): forward() is abstract in the PyTorch base class; this is the
    # minimal concretization implied by (in_features, out_features).
    def _forward_impl(self, x: jnp.ndarray) -> jnp.ndarray:
        if x.ndim != 2 or x.shape[1] != self._in_features:
            raise ValueError(f"expected (batch, {self._in_features}) input, "
                             f"got {x.shape}")
        batch = x.shape[0]
        tm = self._TM
        Mp = _round_up(batch, tm)
        Kp, Np, tn, tk = self._Kp, self._Np, self._tn, self._tk

        xc = x.astype(self._compute_dtype)
        if Mp != batch or Kp != self._in_features:
            x_pad = jnp.zeros((Mp, Kp), self._compute_dtype).at[
                :batch, :self._in_features].set(xc)
        else:
            x_pad = xc

        if self._resident:
            out_pad = pl.pallas_call(
                _linear_resident_kernel,
                out_shape=jax.ShapeDtypeStruct((Mp, Np), self.dtype),
                grid=(Mp // tm, Np // tn),
                in_specs=[
                    pl.BlockSpec((tm, Kp), lambda i, j: (i, 0)),
                    pl.BlockSpec((Kp, tn), lambda i, j: (0, j)),
                    pl.BlockSpec((1, tn), lambda i, j: (0, j)),
                ],
                out_specs=pl.BlockSpec((tm, tn), lambda i, j: (i, j)),
                compiler_params=pltpu.CompilerParams(
                    dimension_semantics=("parallel", "parallel")),
            )(x_pad, self._w_pad, self._b_pad)
        else:
            out_pad = pl.pallas_call(
                _linear_tiled_kernel,
                out_shape=jax.ShapeDtypeStruct((Mp, Np), self.dtype),
                grid=(Mp // tm, Np // tn, Kp // tk),
                in_specs=[
                    pl.BlockSpec((tm, tk), lambda i, j, k: (i, k)),
                    pl.BlockSpec((tk, tn), lambda i, j, k: (k, j)),
                    pl.BlockSpec((1, tn), lambda i, j, k: (0, j)),
                ],
                out_specs=pl.BlockSpec((tm, tn), lambda i, j, k: (i, j)),
                scratch_shapes=[pltpu.VMEM((tm, tn), jnp.float32)],
                compiler_params=pltpu.CompilerParams(
                    dimension_semantics=("parallel", "parallel", "arbitrary")),
            )(x_pad, self._w_pad, self._b_pad)

        return out_pad[:batch, :self._out_features]

    def forward(self, x: jnp.ndarray) -> jnp.ndarray:
        return self._forward_fn(jnp.asarray(x))

    def predict(self, x: jnp.ndarray) -> jnp.ndarray:
        # ensure_device_and_dtype / eval-mode / no-grad are implicit in JAX.
        return self.forward(x)

    # --- regularization terms -------------------------------------------------
    def _param_sums(self):
        if self._cached_sums is not None:
            return self._cached_sums
        rt = self._reg_row_tile
        cols = self._REG_COLS
        l1_sum, l2_sum = pl.pallas_call(
            _reg_kernel,
            out_shape=(
                jax.ShapeDtypeStruct((1, 1), jnp.float32),
                jax.ShapeDtypeStruct((1, 1), jnp.float32),
            ),
            grid=(self._reg_grid,),
            in_specs=[pl.BlockSpec((rt, cols), lambda i: (i, 0))],
            out_specs=(
                pl.BlockSpec((1, 1), lambda i: (0, 0)),
                pl.BlockSpec((1, 1), lambda i: (0, 0)),
            ),
            scratch_shapes=[
                pltpu.VMEM((rt, cols), jnp.float32),
                pltpu.VMEM((rt, cols), jnp.float32),
            ],
            compiler_params=pltpu.CompilerParams(
                dimension_semantics=("arbitrary",)),
        )(self._params_2d)
        self._cached_sums = (l1_sum[0, 0], l2_sum[0, 0])
        return self._cached_sums

    def l1(self, _lambda: float = 1e-4) -> jnp.ndarray:
        l1_sum, _ = self._param_sums()
        return (_lambda * l1_sum).astype(self.dtype)

    def l2(self, _lambda: float = 1e-4) -> jnp.ndarray:
        _, l2_sum = self._param_sums()
        return (_lambda * l2_sum / 2.0).astype(self.dtype)

    def elastic_net(self, alpha: float = 1e-4, rho: float = 0.5) -> jnp.ndarray:
        # Single memoized reduction pass feeds both terms.
        l1_sum, l2_sum = self._param_sums()
        return (alpha * (rho * l1_sum + (1.0 - rho) * l2_sum / 2.0)
                ).astype(self.dtype)


# ---------------------------------------------------------------------------
def _check_model(model: BaseNeuralNetworkPallas, batch: int, seed: int):
    x = jax.random.normal(jax.random.PRNGKey(seed),
                          (batch, model.in_features), jnp.float32)

    y = jax.block_until_ready(model.predict(x))
    l1_val = jax.block_until_ready(model.l1())
    l2_val = jax.block_until_ready(model.l2())
    en_val = jax.block_until_ready(model.elastic_net())

    # Plain-JAX references (same bf16-operand / f32-accumulate math).
    xw = jnp.dot(x.astype(jnp.bfloat16), model.weight.astype(jnp.bfloat16),
                 preferred_element_type=jnp.float32)
    y_ref = (xw + model.bias.astype(jnp.float32)).astype(model.dtype)
    w32 = model.weight.astype(jnp.float32)
    b32 = model.bias.astype(jnp.float32)
    s_abs = jnp.sum(jnp.abs(w32)) + jnp.sum(jnp.abs(b32))
    s_sq = jnp.sum(w32 * w32) + jnp.sum(b32 * b32)
    l1_ref = 1e-4 * s_abs
    l2_ref = 1e-4 * s_sq / 2.0
    en_ref = 1e-4 * (0.5 * s_abs + 0.5 * s_sq / 2.0)

    assert y.shape == (batch, model.out_features), "bad output shape"
    assert jnp.allclose(y, y_ref, atol=1e-3, rtol=1e-3), "forward mismatch"
    assert jnp.allclose(l1_val, l1_ref, atol=1e-5, rtol=1e-4), "l1 mismatch"
    assert jnp.allclose(l2_val, l2_ref, atol=1e-5, rtol=1e-4), "l2 mismatch"
    assert jnp.allclose(en_val, en_ref, atol=1e-5, rtol=1e-4), "elastic_net mismatch"


if __name__ == "__main__":
    # Small case consistent with the module — exercises the resident-W path
    # and the padding path (32 < 128, batch 2 < tm).
    m1 = BaseNeuralNetworkPallas(in_features=32, out_features=32,
                                 model_name="demo_small")
    _check_model(m1, batch=2, seed=0)

    # Non-aligned case, forced onto the tiled-K path (3 K steps) to exercise
    # the accumulator init/finalize logic and multi-tile padding.
    m2 = BaseNeuralNetworkPallas(in_features=300, out_features=150,
                                 model_name="demo_tiled",
                                 resident_limit_bytes=0, tk_max=128)
    _check_model(m2, batch=10, seed=1)

    print("KERNEL_OK")
</pallas_src>

<mosaic_0001>
module attributes {stable_mosaic.version = 11 : i64} {
  func.func @_linear_resident_kernel(%arg0: i32, %arg1: i32, %arg2: memref<128x128xbf16, #tpu.memory_space<vmem>>, %arg3: memref<128x128xbf16, #tpu.memory_space<vmem>>, %arg4: memref<1x128xf32, #tpu.memory_space<vmem>>, %arg5: memref<128x128xf32, #tpu.memory_space<vmem>>) attributes {dimension_semantics = [#tpu.dimension_semantics<parallel>, #tpu.dimension_semantics<parallel>], iteration_bounds = array<i64: 1, 1>, scalar_prefetch = 0 : i64, scratch_operands = 0 : i64, tpu.core_type = #tpu.core_type<tc>, window_params = [{transform_indices = @transform_0, window_bounds = array<i64: 128, 128>}, {transform_indices = @transform_1, window_bounds = array<i64: 128, 128>}, {transform_indices = @transform_2, window_bounds = array<i64: 1, 128>}, {transform_indices = @transform_3, window_bounds = array<i64: 128, 128>}]} {
    %c0 = arith.constant 0 : index
    %c0_0 = arith.constant 0 : index
    %0 = vector.load %arg2[%c0, %c0_0] : memref<128x128xbf16, #tpu.memory_space<vmem>>, vector<128x128xbf16>
    %c0_1 = arith.constant 0 : index
    %c0_2 = arith.constant 0 : index
    %1 = vector.load %arg3[%c0_1, %c0_2] : memref<128x128xbf16, #tpu.memory_space<vmem>>, vector<128x128xbf16>
    %cst = arith.constant dense<0.000000e+00> : vector<128x128xf32>
    %2 = tpu.matmul %0, %1, %cst {dimension_numbers = #tpu.dot_dimension_numbers<[1], [0], [0], [1], [0, 0, 1, 1], [], []>} : vector<128x128xbf16>, vector<128x128xbf16>, vector<128x128xf32> -> vector<128x128xf32>
    %c0_3 = arith.constant 0 : index
    %c0_4 = arith.constant 0 : index
    %3 = vector.load %arg4[%c0_3, %c0_4] : memref<1x128xf32, #tpu.memory_space<vmem>>, vector<1x128xf32>
    %4 = vector.broadcast %3 : vector<1x128xf32> to vector<128x128xf32>
    %5 = arith.addf %2, %4 : vector<128x128xf32>
    %c0_5 = arith.constant 0 : index
    %c0_6 = arith.constant 0 : index
    %6 = vector.load %arg5[%c0_5, %c0_6] : memref<128x128xf32, #tpu.memory_space<vmem>>, vector<128x128xf32>
    tpu.vector_store %arg5[%c0_5, %c0_6], %5 {strides = array<i32>} : memref<128x128xf32, #tpu.memory_space<vmem>>, vector<128x128xf32>,
    return
  }
  func.func @transform_0(%arg0: i32, %arg1: i32) -> (i32, i32) {
    %c0_i32 = arith.constant 0 : i32
    %c0_i32_0 = arith.constant 0 : i32
    return %arg0, %c0_i32 : i32, i32
  }
  func.func @transform_1(%arg0: i32, %arg1: i32) -> (i32, i32) {
    %c0_i32 = arith.constant 0 : i32
    %c0_i32_0 = arith.constant 0 : i32
    return %c0_i32, %arg1 : i32, i32
  }
  func.func @transform_2(%arg0: i32, %arg1: i32) -> (i32, i32) {
    %c0_i32 = arith.constant 0 : i32
    %c0_i32_0 = arith.constant 0 : i32
    return %c0_i32, %arg1 : i32, i32
  }
  func.func @transform_3(%arg0: i32, %arg1: i32) -> (i32, i32) {
    %c0_i32 = arith.constant 0 : i32
    return %arg0, %arg1 : i32, i32
  }
}

</mosaic_0001>

<bundles_post_ra>
// kernel: _forward_impl.1
= control target key start
LH: loop header
LB: loop body
LE: loop exit
PB: predicated region body
PF: predicated region fallthrough
CT: control target
= control target key end

     0   :  { %s439_s1 = inlined_call_operand.vmem [shape: bf16[128,128], index: 1, kind: input, shape index: {}]   ;;  %s440_s2 = inlined_call_operand.vmem [shape: f32[1,128], index: 2, kind: input, shape index: {}]   ;;  %s441_s0 = inlined_call_operand.vmem [shape: bf16[128,128], index: 0, kind: input, shape index: {}]   ;;  %s442_s3 = inlined_call_operand.vmem [shape: f32[128,128], index: 3, kind: output, shape index: {}]  }
   0x1   :  { %v294_v0 = vld [vmem:[%s439_s1 + $0x38] sm:$0xff]  ;;  %v293_v1 = vld [vmem:[%s439_s1 + $0x30] sm:$0xff]  ;;  %v292_v2 = vld [vmem:[%s439_s1 + $0x28] sm:$0xff] }
   0x2   :  { %146 = vmatpush.bf16.msra.mxu0 %v294_v0  ;;  %295 = vmatpush.bf16.msra.mxu1 %v294_v0  ;;  %v291_v3 = vld [vmem:[%s439_s1 + $0x20] sm:$0xff]  ;;  %v290_v4 = vld [vmem:[%s439_s1 + $0x18] sm:$0xff]  ;;  %v289_v5 = vld [vmem:[%s439_s1 + $0x10] sm:$0xff] }
   0x3   :  { %296 = vmatpush.bf16.msra.mxu2 %v294_v0  ;;  %297 = vmatpush.bf16.msra.mxu3 %v294_v0  ;;  %v288_v6 = vld [vmem:[%s439_s1 + $0x8] sm:$0xff]  ;;  %v287_v7 = vld [vmem:[%s439_s1] sm:$0xff]  ;;  %v281_v9 = vld [vmem:[%s441_s0 + $0x10] sm:$0xff] }
   0x4   :  { %v279_v8 = vld [vmem:[%s441_s0] sm:$0xff]  ;;  %v285_v11 = vld [vmem:[%s441_s0 + $0x30] sm:$0xff]  ;;  %v280_v12 = vld [vmem:[%s441_s0 + $0x8] sm:$0xff] }
   0x5   :  { %v283_v10 = vld [vmem:[%s441_s0 + $0x20] sm:$0xff]  ;;  %v282_v13 = vld [vmem:[%s441_s0 + $0x18] sm:$0xff]  ;;  %v284_v14 = vld [vmem:[%s441_s0 + $0x28] sm:$0xff] }
   0x6   :  { %147 = vmatpush.bf16.msra.mxu0 %v293_v1  ;;  %298 = vmatpush.bf16.msra.mxu1 %v293_v1  ;;  %v286_v15 = vld [vmem:[%s441_s0 + $0x38] sm:$0xff]  ;;  %v319_v16 = vld [vmem:[%s440_s2] ss:$0 sm:$0xff] }
   0x7   :  { %299 = vmatpush.bf16.msra.mxu2 %v293_v1  ;;  %300 = vmatpush.bf16.msra.mxu3 %v293_v1 }
   0xa   :  { %148 = vmatpush.bf16.msra.mxu0 %v292_v2  ;;  %301 = vmatpush.bf16.msra.mxu1 %v292_v2 }
   0xb   :  { %302 = vmatpush.bf16.msra.mxu2 %v292_v2  ;;  %303 = vmatpush.bf16.msra.mxu3 %v292_v2 }
   0xe   :  { %149 = vmatpush.bf16.msra.mxu0 %v291_v3  ;;  %304 = vmatpush.bf16.msra.mxu1 %v291_v3 }
   0xf   :  { %305 = vmatpush.bf16.msra.mxu2 %v291_v3  ;;  %306 = vmatpush.bf16.msra.mxu3 %v291_v3 }
  0x12   :  { %150 = vmatpush.bf16.msra.mxu0 %v290_v4  ;;  %307 = vmatpush.bf16.msra.mxu1 %v290_v4 }
  0x13   :  { %308 = vmatpush.bf16.msra.mxu2 %v290_v4  ;;  %309 = vmatpush.bf16.msra.mxu3 %v290_v4 }
  0x16   :  { %151 = vmatpush.bf16.msra.mxu0 %v289_v5  ;;  %310 = vmatpush.bf16.msra.mxu1 %v289_v5 }
  0x17   :  { %311 = vmatpush.bf16.msra.mxu2 %v289_v5  ;;  %312 = vmatpush.bf16.msra.mxu3 %v289_v5 }
  0x1a   :  { %152 = vmatpush.bf16.msra.mxu0 %v288_v6  ;;  %313 = vmatpush.bf16.msra.mxu1 %v288_v6 }
  0x1b   :  { %314 = vmatpush.bf16.msra.mxu2 %v288_v6  ;;  %315 = vmatpush.bf16.msra.mxu3 %v288_v6 }
  0x1e   :  { %153 = vmatpush.bf16.msra.mxu0 %v287_v7  ;;  %316 = vmatpush.bf16.msra.mxu1 %v287_v7 }
  0x1f   :  { %317 = vmatpush.bf16.msra.mxu2 %v287_v7  ;;  %318 = vmatpush.bf16.msra.mxu3 %v287_v7 }
  0x21   :  { %154 = vmatmul.bf16.vlgmr.msra.gmra.mxu0 %v279_v8  ;;  %164 = vmatmul.bf16.vlgmr.msra.gmra.mxu1 %v281_v9 }
  0x22   :  { %174 = vmatmul.bf16.vlgmr.msra.gmra.mxu2 %v283_v10  ;;  %184 = vmatmul.bf16.vlgmr.msra.gmra.mxu3 %v285_v11 }
  0x31   :  { %159 = vmatmul.bf16.gmra.mxu0 %v280_v12  ;;  %169 = vmatmul.bf16.gmra.mxu1 %v282_v13 }
  0x32   :  { %179 = vmatmul.bf16.gmra.mxu2 %v284_v14  ;;  %189 = vmatmul.bf16.gmra.mxu3 %v286_v15 }
  0x9e   :  { %v155_v17 = vpop.f32.mrf.mxu0  ;;  %v165_v18 = vpop.f32.mrf.mxu1 }
  0x9f   :  { %v156_v19 = vadd.f32 %v319_v16, %v155_v17  ;;  %v166_v20 = vadd.f32 %v319_v16, %v165_v18 }
  0xa1   :  { %195 = vst [vmem:[%s442_s3] sm:$0xff] %v156_v19 }
  0xa2   :  { %199 = vst [vmem:[%s442_s3 + $0x20] sm:$0xff] %v166_v20 }
  0xa5   :  { %v175_v21 = vpop.f32.mrf.mxu2  ;;  %v185_v22 = vpop.f32.mrf.mxu3 }
  0xa6   :  { %v176_v23 = vadd.f32 %v319_v16, %v175_v21  ;;  %v186_v24 = vadd.f32 %v319_v16, %v185_v22  ;;  %v157_v25 = vpop.f32.mrf.mxu0  ;;  %v167_v26 = vpop.f32.mrf.mxu1 }
  0xa7   :  { %v158_v27 = vadd.f32 %v319_v16, %v157_v25  ;;  %v168_v28 = vadd.f32 %v319_v16, %v167_v26 }
  0xa8   :  { %203 = vst [vmem:[%s442_s3 + $0x40] sm:$0xff] %v176_v23 }
  0xa9   :  { %207 = vst [vmem:[%s442_s3 + $0x60] sm:$0xff] %v186_v24 }
  0xaa   :  { %196 = vst [vmem:[%s442_s3 + $0x8] sm:$0xff] %v158_v27 }
  0xab   :  { %200 = vst [vmem:[%s442_s3 + $0x28] sm:$0xff] %v168_v28 }
  0xad   :  { %v177_v29 = vpop.f32.mrf.mxu2  ;;  %v187_v30 = vpop.f32.mrf.mxu3 }
  0xae   :  { %v178_v31 = vadd.f32 %v319_v16, %v177_v29  ;;  %v188_v32 = vadd.f32 %v319_v16, %v187_v30  ;;  %v160_v33 = vpop.f32.mrf.mxu0  ;;  %v170_v34 = vpop.f32.mrf.mxu1 }
  0xaf   :  { %v161_v35 = vadd.f32 %v319_v16, %v160_v33  ;;  %v171_v36 = vadd.f32 %v319_v16, %v170_v34 }
  0xb0   :  { %204 = vst [vmem:[%s442_s3 + $0x48] sm:$0xff] %v178_v31 }
  0xb1   :  { %208 = vst [vmem:[%s442_s3 + $0x68] sm:$0xff] %v188_v32 }
  0xb2   :  { %197 = vst [vmem:[%s442_s3 + $0x10] sm:$0xff] %v161_v35 }
  0xb3   :  { %201 = vst [vmem:[%s442_s3 + $0x30] sm:$0xff] %v171_v36 }
  0xb5   :  { %v180_v37 = vpop.f32.mrf.mxu2  ;;  %v190_v38 = vpop.f32.mrf.mxu3 }
  0xb6   :  { %v181_v39 = vadd.f32 %v319_v16, %v180_v37  ;;  %v191_v40 = vadd.f32 %v319_v16, %v190_v38  ;;  %v162_v41 = vpop.f32.mrf.mxu0  ;;  %v172_v42 = vpop.f32.mrf.mxu1 }
  0xb7   :  { %v163_v43 = vadd.f32 %v319_v16, %v162_v41  ;;  %v173_v44 = vadd.f32 %v319_v16, %v172_v42 }
  0xb8   :  { %205 = vst [vmem:[%s442_s3 + $0x50] sm:$0xff] %v181_v39 }
  0xb9   :  { %209 = vst [vmem:[%s442_s3 + $0x70] sm:$0xff] %v191_v40 }
  0xba   :  { %198 = vst [vmem:[%s442_s3 + $0x18] sm:$0xff] %v163_v43 }
  0xbb   :  { %202 = vst [vmem:[%s442_s3 + $0x38] sm:$0xff] %v173_v44 }
  0xbd   :  { %v182_v45 = vpop.f32.mrf.mxu2  ;;  %v192_v46 = vpop.f32.mrf.mxu3 }
  0xbe   :  { %v183_v47 = vadd.f32 %v319_v16, %v182_v45  ;;  %v193_v48 = vadd.f32 %v319_v16, %v192_v46 }
  0xc0   :  { %206 = vst [vmem:[%s442_s3 + $0x58] sm:$0xff] %v183_v47 }
  0xc1   :  { %210 = vst [vmem:[%s442_s3 + $0x78] sm:$0xff] %v193_v48 }

</bundles_post_ra>
